<compile_context>
chip_gen: v6e
topology: v6e:2x2x1
jax: 0.10.0
libtpu: 0.0.40
codegen_flags: <defaults>
</compile_context>

<pallas_src>
import numpy as np
import jax
import jax.numpy as jnp
from jax.experimental import pallas as pl
from jax.experimental.pallas import tpu as pltpu


def _round_up(v, m):
    return -(-v // m) * m


# ---------------------------------------------------------------------------
# Kernel: one grid step == one block of BB images
# ---------------------------------------------------------------------------
def concept_prefix_kernel(x_ref, w1_ref, sum_ref, wout_ref, bout_ref, out_ref):
    """
    x_ref    : (BB*N, D)        bf16/f32  streamed per step
    w1_ref   : (D, C*T)         bf16/f32  concept-linear weight (transposed)
    sum_ref  : (C*T, C)         f32       0/1 token-summation matrix (exact)
    wout_ref : (C, OUT_LANES)   f32       [ I_C | W_cls^T | 0 ]  fused epilogue
    bout_ref : (1, OUT_LANES)   f32       [ 0   | b_cls   | 0 ]
    out_ref  : (BB, OUT_LANES)  f32       lanes 0..C-1 = concepts, C..C+K-1 = logits
    """
    BB = out_ref.shape[0]
    N = x_ref.shape[0] // BB

    # Single lane-wide MXU matmul over all concept*token columns, f32 accumulate.
    qk = jnp.dot(x_ref[...], w1_ref[...],
                 preferred_element_type=jnp.float32)               # (BB*N, C*T)

    # Numerically-safe exp: the per-row max cancels exactly after the concept
    # normalization below, so semantics match torch.exp(qk).
    m = jnp.max(qk, axis=1, keepdims=True)                         # (BB*N, 1)
    p = jnp.exp(qk - m)                                            # (BB*N, C*T)

    # Sum over tokens-per-concept (dim=3 in the PyTorch code) as one small
    # exact 0/1 matmul on the otherwise-idle MXU (no intra-vreg lane slicing).
    acc = jnp.dot(p, sum_ref[...],
                  preferred_element_type=jnp.float32)              # (BB*N, C)

    # Normalize over concepts (dim=2).  EUP reciprocal keeps VALU slots clear.
    denom = jnp.sum(acc, axis=1, keepdims=True)                    # (BB*N, 1)
    score = acc * pl.reciprocal(denom, approx=False)               # (BB*N, C)

    # Mean over the N image tokens (dim=1): free major-axis split + sublane
    # (XLU) reduce -- no pooling matmul, no (BB, BB*N) operand.
    conc = jnp.sum(score.reshape(BB, N, -1), axis=1) * (1.0 / N)   # (BB, C)

    # Fused lane-dense epilogue: one matmul emits [concepts | logits | 0] as a
    # single 128-wide f32 slab (identity columns pass concepts through exactly).
    out_ref[...] = (jnp.dot(conc, wout_ref[...],
                            preferred_element_type=jnp.float32)
                    + bout_ref[...])


# ---------------------------------------------------------------------------
# Blocking / VMEM heuristics (per-generation via get_tpu_info)
# ---------------------------------------------------------------------------
def _default_vmem_limit():
    try:
        cap = int(pltpu.get_tpu_info().vmem_capacity_bytes)
    except Exception:
        cap = 64 << 20            # conservative fallback (v7x per-core VMEM)
    # Leave headroom for compiler scratch; never exceed 96 MiB.
    return int(min(max(cap - (16 << 20), 16 << 20), 96 << 20))


def _num_tensorcores():
    """Best-effort TensorCore count (v7x has 2 per chip); default 1."""
    try:
        info = pltpu.get_tpu_info()
        for attr in ("num_cores", "tensorcores_per_chip", "num_tensorcores",
                     "cores_per_chip"):
            v = getattr(info, attr, None)
            if v:
                return int(v)
    except Exception:
        pass
    return 1


def _choose_block_b(B, N, D, C, T, K, x_itemsize, vmem_limit_bytes, align,
                    num_cores):
    """Largest sublane-aligned image block whose (lane-padding-aware) VMEM
    footprint fits, capped so the TensorCores / pipeline get several grid
    steps without dropping below the ~512-row HBM-roofline knee per step."""
    def lanes(v):
        return _round_up(v, 128)

    def subl(v, itemsize=4):
        return _round_up(v, 8 * (4 // itemsize))

    CT = C * T
    out_lanes = lanes(C + K)

    # Grid-invariant operand blocks (double-buffered by the auto-pipeline).
    fixed = 2 * (subl(D, x_itemsize) * lanes(CT) * x_itemsize     # w1
                 + subl(CT) * lanes(C) * 4                        # sum matrix
                 + subl(C) * out_lanes * 4                        # epilogue W
                 + 8 * out_lanes * 4)                             # epilogue b

    # Per-image footprint: double-buffered x rows + f32 intermediates
    # (qk, p at C*T lanes; acc, score at C lanes) + double-buffered output row.
    per_image = (2 * N * lanes(D) * x_itemsize
                 + 2 * N * lanes(CT) * 4
                 + 2 * N * lanes(C) * 4
                 + 2 * out_lanes * 4)

    budget = int(vmem_limit_bytes * 0.7) - fixed
    bb = max(1, budget // max(per_image, 1))
    bb = max(align, (bb // align) * align)          # sublane-aligned blocks
    bb = min(bb, _round_up(B, align))               # don't over-pad small batches

    steps_wanted = max(int(num_cores), 2)           # TCs + pipeline overlap
    if B > align:
        # Keep several grid steps alive, but never shrink a step below ~512
        # sublane rows (measured HBM-roofline knee for streamed tiles).
        knee_bb = _round_up(max(1, -(-512 // N)), align)
        per_step_bb = _round_up(-(-B // steps_wanted), align)
        bb = min(bb, max(per_step_bb, knee_bb))
    return int(bb)


# ---------------------------------------------------------------------------
# Wrapper
# ---------------------------------------------------------------------------
def blip_concept_prefix_forward(x, w_linear, w_cls, b_cls,
                                num_concepts, num_tokens_per_concept,
                                *, block_b=None, compute_dtype=jnp.bfloat16):
    """x: (B, N_TOKENS, EMB_DIM); returns (logits (B, K), concepts (B, C))."""
    B, N, D = x.shape
    C = num_concepts
    T = num_tokens_per_concept
    K = b_cls.shape[-1]
    CT = C * T
    OUT = _round_up(C + K, 128)                   # lane-dense packed output width

    x_itemsize = jnp.dtype(compute_dtype).itemsize
    align = 8 * (4 // x_itemsize)                 # 8 for f32 blocks, 16 for bf16

    vmem_limit = _default_vmem_limit()
    num_cores = _num_tensorcores()
    if block_b is None:
        BB = _choose_block_b(B, N, D, C, T, K, x_itemsize, vmem_limit, align,
                             num_cores)
    else:
        BB = int(_round_up(block_b, align))
    B_pad = _round_up(B, BB)
    grid = (B_pad // BB,)

    # ---- plain-JAX glue: layout plumbing only, no compute hoisted ----
    # nn.Linear weight is (C*T, D); row k = (concept k // T, token k % T),
    # exactly the order the PyTorch reshape (B, N, C, T) expects.
    w1 = w_linear.T.astype(compute_dtype)                               # (D, C*T)
    # 0/1 matrix summing the T token columns of each concept (exact in f32).
    sum_mat = jnp.repeat(jnp.eye(C, dtype=jnp.float32), T, axis=0)      # (C*T, C)
    # Fused epilogue: out = conc @ [I_C | W_cls^T | 0] + [0 | b_cls | 0].
    wout = jnp.zeros((C, OUT), jnp.float32)
    wout = wout.at[:, :C].set(jnp.eye(C, dtype=jnp.float32))
    wout = wout.at[:, C:C + K].set(w_cls.T.astype(jnp.float32))
    bout = jnp.zeros((1, OUT), jnp.float32)
    bout = bout.at[0, C:C + K].set(b_cls.astype(jnp.float32))

    x_c = x.astype(compute_dtype)
    if B_pad != B:
        x_c = jnp.pad(x_c, ((0, B_pad - B), (0, 0), (0, 0)))
    x_flat = x_c.reshape(B_pad * N, D)            # contiguous, free HBM reshape

    packed = pl.pallas_call(
        concept_prefix_kernel,
        out_shape=jax.ShapeDtypeStruct((B_pad, OUT), jnp.float32),
        grid_spec=pltpu.PrefetchScalarGridSpec(
            num_scalar_prefetch=0,
            grid=grid,
            in_specs=[
                pl.BlockSpec((BB * N, D), lambda b: (b, 0)),   # x (streamed)
                pl.BlockSpec((D, CT), lambda b: (0, 0)),       # concept linear
                pl.BlockSpec((CT, C), lambda b: (0, 0)),       # token-sum matrix
                pl.BlockSpec((C, OUT), lambda b: (0, 0)),      # fused epilogue W
                pl.BlockSpec((1, OUT), lambda b: (0, 0)),      # fused epilogue b
            ],
            out_specs=pl.BlockSpec((BB, OUT), lambda b: (b, 0)),
        ),
        compiler_params=pltpu.CompilerParams(
            dimension_semantics=("parallel",),
            vmem_limit_bytes=int(vmem_limit)),
    )(x_flat, w1, sum_mat, wout, bout)

    concepts = packed[:B, :C]
    logits = packed[:B, C:C + K]
    return logits, concepts


# ---------------------------------------------------------------------------
# Pure-JAX reference mirroring the PyTorch forward
# ---------------------------------------------------------------------------
def reference_forward(x, w_linear, w_cls, b_cls, C, T):
    B, N, D = x.shape
    qk = x.reshape(-1, D) @ w_linear.T                   # nn.Linear, bias=False
    qk = qk.reshape(B, N, C, T)
    score = jnp.exp(qk).sum(axis=3)
    score = score / score.sum(axis=2, keepdims=True)
    c = score.mean(axis=1)
    logits = c @ w_cls.T + b_cls
    return logits, c


if __name__ == "__main__":
    # Small shapes implied by the module's forward:
    B = 20                # batch (exercises padding)
    N_TOKENS = 8          # vision tokens
    EMB_DIM = 32          # projector.config.vision_config.hidden_size (stand-in)
    NUM_CONCEPTS = 16
    NUM_TOKENS_PER_CONCEPT = 2
    NUM_CLASSES = 4

    key = jax.random.PRNGKey(0)
    k_x, k_w1, k_w2, k_b2 = jax.random.split(key, 4)

    # Deterministic parameter init (synthetic; not loading a checkpoint).
    x = jax.random.normal(k_x, (B, N_TOKENS, EMB_DIM), dtype=jnp.float32)
    w_linear = 0.05 * jax.random.normal(
        k_w1, (NUM_CONCEPTS * NUM_TOKENS_PER_CONCEPT, EMB_DIM), dtype=jnp.float32)
    w_cls = 0.05 * jax.random.normal(
        k_w2, (NUM_CLASSES, NUM_CONCEPTS), dtype=jnp.float32)
    b_cls = 0.05 * jax.random.normal(k_b2, (NUM_CLASSES,), dtype=jnp.float32)

    logits, concepts = blip_concept_prefix_forward(
        x, w_linear, w_cls, b_cls, NUM_CONCEPTS, NUM_TOKENS_PER_CONCEPT)
    logits = jax.block_until_ready(logits)
    concepts = jax.block_until_ready(concepts)

    # Reference computed with the same bf16-quantized streaming inputs the
    # kernel uses (f32 math elsewhere), mirroring the PyTorch forward.
    x_q = x.astype(jnp.bfloat16).astype(jnp.float32)
    w1_q = w_linear.astype(jnp.bfloat16).astype(jnp.float32)
    ref_logits, ref_concepts = reference_forward(
        x_q, w1_q, w_cls, b_cls, NUM_CONCEPTS, NUM_TOKENS_PER_CONCEPT)

    np.testing.assert_allclose(np.asarray(logits), np.asarray(ref_logits),
                               rtol=1e-4, atol=1e-5)
    np.testing.assert_allclose(np.asarray(concepts), np.asarray(ref_concepts),
                               rtol=1e-4, atol=1e-5)
    print("KERNEL_OK")
</pallas_src>

<mosaic_0001>
module attributes {stable_mosaic.version = 11 : i64} {
  func.func @concept_prefix_kernel(%arg0: i32, %arg1: memref<256x32xbf16, #tpu.memory_space<vmem>>, %arg2: memref<32x32xbf16, #tpu.memory_space<vmem>>, %arg3: memref<32x16xf32, #tpu.memory_space<vmem>>, %arg4: memref<16x128xf32, #tpu.memory_space<vmem>>, %arg5: memref<1x128xf32, #tpu.memory_space<vmem>>, %arg6: memref<32x128xf32, #tpu.memory_space<vmem>>) attributes {dimension_semantics = [#tpu.dimension_semantics<parallel>], iteration_bounds = array<i64: 1>, scalar_prefetch = 0 : i64, scratch_operands = 0 : i64, tpu.core_type = #tpu.core_type<tc>, window_params = [{transform_indices = @transform_0, window_bounds = array<i64: 256, 32>}, {pipeline_mode = #tpu.pipeline_mode<synchronous>, transform_indices = @transform_1, window_bounds = array<i64: 32, 32>}, {pipeline_mode = #tpu.pipeline_mode<synchronous>, transform_indices = @transform_2, window_bounds = array<i64: 32, 16>}, {pipeline_mode = #tpu.pipeline_mode<synchronous>, transform_indices = @transform_3, window_bounds = array<i64: 16, 128>}, {pipeline_mode = #tpu.pipeline_mode<synchronous>, transform_indices = @transform_4, window_bounds = array<i64: 1, 128>}, {transform_indices = @transform_5, window_bounds = array<i64: 32, 128>}]} {
    %c0 = arith.constant 0 : index
    %c0_0 = arith.constant 0 : index
    %0 = vector.load %arg1[%c0, %c0_0] : memref<256x32xbf16, #tpu.memory_space<vmem>>, vector<256x32xbf16>
    %c0_1 = arith.constant 0 : index
    %c0_2 = arith.constant 0 : index
    %1 = vector.load %arg2[%c0_1, %c0_2] : memref<32x32xbf16, #tpu.memory_space<vmem>>, vector<32x32xbf16>
    %cst = arith.constant dense<0.000000e+00> : vector<256x32xf32>
    %2 = tpu.matmul %0, %1, %cst {dimension_numbers = #tpu.dot_dimension_numbers<[1], [0], [0], [1], [0, 0, 1, 1], [], []>} : vector<256x32xbf16>, vector<32x32xbf16>, vector<256x32xf32> -> vector<256x32xf32>
    %cst_3 = arith.constant dense<0xFF800000> : vector<256xf32>
    %3 = vector.multi_reduction <maximumf>, %2, %cst_3 [1] : vector<256x32xf32> to vector<256xf32>
    %4 = vector.shape_cast %3 : vector<256xf32> to vector<256x1xf32>
    %5 = vector.broadcast %4 : vector<256x1xf32> to vector<256x32xf32>
    %6 = arith.subf %2, %5 : vector<256x32xf32>
    %7 = math.exp %6 : vector<256x32xf32>
    %c0_4 = arith.constant 0 : index
    %c0_5 = arith.constant 0 : index
    %8 = vector.load %arg3[%c0_4, %c0_5] : memref<32x16xf32, #tpu.memory_space<vmem>>, vector<32x16xf32>
    %cst_6 = arith.constant dense<0.000000e+00> : vector<256x16xf32>
    %9 = tpu.matmul %7, %8, %cst_6 {dimension_numbers = #tpu.dot_dimension_numbers<[1], [0], [0], [1], [0, 0, 1, 1], [], []>} : vector<256x32xf32>, vector<32x16xf32>, vector<256x16xf32> -> vector<256x16xf32>
    %cst_7 = arith.constant dense<0.000000e+00> : vector<256xf32>
    %10 = vector.multi_reduction <add>, %9, %cst_7 [1] : vector<256x16xf32> to vector<256xf32>
    %11 = vector.shape_cast %10 : vector<256xf32> to vector<256x1xf32>
    %12 = tpu.reciprocal %11 : vector<256x1xf32> -> vector<256x1xf32>
    %13 = vector.broadcast %12 : vector<256x1xf32> to vector<256x16xf32>
    %14 = arith.mulf %9, %13 : vector<256x16xf32>
    %15 = vector.shape_cast %14 : vector<256x16xf32> to vector<32x8x16xf32>
    %cst_8 = arith.constant dense<0.000000e+00> : vector<32x16xf32>
    %16 = vector.multi_reduction <add>, %15, %cst_8 [1] : vector<32x8x16xf32> to vector<32x16xf32>
    %cst_9 = arith.constant 1.250000e-01 : f32
    %17 = vector.broadcast %cst_9 : f32 to vector<32x16xf32>
    %18 = arith.mulf %16, %17 : vector<32x16xf32>
    %c0_10 = arith.constant 0 : index
    %c0_11 = arith.constant 0 : index
    %19 = vector.load %arg4[%c0_10, %c0_11] : memref<16x128xf32, #tpu.memory_space<vmem>>, vector<16x128xf32>
    %cst_12 = arith.constant dense<0.000000e+00> : vector<32x128xf32>
    %20 = tpu.matmul %18, %19, %cst_12 {dimension_numbers = #tpu.dot_dimension_numbers<[1], [0], [0], [1], [0, 0, 1, 1], [], []>} : vector<32x16xf32>, vector<16x128xf32>, vector<32x128xf32> -> vector<32x128xf32>
    %c0_13 = arith.constant 0 : index
    %c0_14 = arith.constant 0 : index
    %21 = vector.load %arg5[%c0_13, %c0_14] : memref<1x128xf32, #tpu.memory_space<vmem>>, vector<1x128xf32>
    %22 = vector.broadcast %21 : vector<1x128xf32> to vector<32x128xf32>
    %23 = arith.addf %20, %22 : vector<32x128xf32>
    %c0_15 = arith.constant 0 : index
    %c0_16 = arith.constant 0 : index
    %24 = vector.load %arg6[%c0_15, %c0_16] : memref<32x128xf32, #tpu.memory_space<vmem>>, vector<32x128xf32>
    tpu.vector_store %arg6[%c0_15, %c0_16], %23 {strides = array<i32>} : memref<32x128xf32, #tpu.memory_space<vmem>>, vector<32x128xf32>,
    return
  }
  func.func @transform_0(%arg0: i32) -> (i32, i32) {
    %c0_i32 = arith.constant 0 : i32
    %c0_i32_0 = arith.constant 0 : i32
    return %arg0, %c0_i32 : i32, i32
  }
  func.func @transform_1(%arg0: i32) -> (i32, i32) {
    %c0_i32 = arith.constant 0 : i32
    %c0_i32_0 = arith.constant 0 : i32
    %c0_i32_1 = arith.constant 0 : i32
    return %c0_i32, %c0_i32_0 : i32, i32
  }
  func.func @transform_2(%arg0: i32) -> (i32, i32) {
    %c0_i32 = arith.constant 0 : i32
    %c0_i32_0 = arith.constant 0 : i32
    %c0_i32_1 = arith.constant 0 : i32
    return %c0_i32, %c0_i32_0 : i32, i32
  }
  func.func @transform_3(%arg0: i32) -> (i32, i32) {
    %c0_i32 = arith.constant 0 : i32
    %c0_i32_0 = arith.constant 0 : i32
    %c0_i32_1 = arith.constant 0 : i32
    return %c0_i32, %c0_i32_0 : i32, i32
  }
  func.func @transform_4(%arg0: i32) -> (i32, i32) {
    %c0_i32 = arith.constant 0 : i32
    %c0_i32_0 = arith.constant 0 : i32
    %c0_i32_1 = arith.constant 0 : i32
    return %c0_i32, %c0_i32_0 : i32, i32
  }
  func.func @transform_5(%arg0: i32) -> (i32, i32) {
    %c0_i32 = arith.constant 0 : i32
    %c0_i32_0 = arith.constant 0 : i32
    return %arg0, %c0_i32 : i32, i32
  }
}

</mosaic_0001>

<bundles_post_ra>
// kernel: tpu_custom_call.1
= control target key start
LH: loop header
LB: loop body
LE: loop exit
PB: predicated region body
PF: predicated region fallthrough
CT: control target
= control target key end

     0   :  { %vm150_vm0 = vcmask 261120   ;;  %s2507_s0 = inlined_call_operand.vmem [shape: bf16[256,32], index: 0, kind: input, shape index: {}]   ;;  %s2508_s1 = inlined_call_operand.vmem [shape: bf16[32,32], index: 1, kind: input, shape index: {}]   ;;  %s2509_s2 = inlined_call_operand.vmem [shape: f32[32,16], index: 2, kind: input, shape index: {}]   ;;  %s2510_s3 = inlined_call_operand.vmem [shape: f32[16,128], index: 3, kind: input, shape index: {}]   ;;  %s2511_s4 = inlined_call_operand.vmem [shape: f32[1,128], index: 4, kind: input, shape index: {}]   ;;  %s2512_s5 = inlined_call_operand.hbm [shape: f32[32,128], index: 5, kind: output, shape index: {}]  }
   0x1   :  { %v1723_v0 = vld [vmem:[%s2508_s1 + $0x8] sm:$0xff]   ;;  %v1724_v1 = vld [vmem:[%s2508_s1] sm:$0xff]   ;;  %v1727_v4 = vld [vmem:[%s2507_s0 + $0x10] sm:$0xff]  }
   0x2   :  { %1614 = vmatprep.subr.bf16.mxu0 %v1723_v0  ;;  %v1725_v2 = vld [vmem:[%s2507_s0] sm:$0xff]   ;;  %v1726_v3 = vld [vmem:[%s2507_s0 + $0x8] sm:$0xff]   ;;  %v1728_v5 = vld [vmem:[%s2507_s0 + $0x18] sm:$0xff]  }
   0x3   :  { %1615 = vmatpush3.bf16.msra.mxu0 %v1723_v0  ;;  %1618 = vmatprep.mubr.msk.bf16.mxu0 %vm150_vm0, %v1725_v2  ;;  %v1729_v6 = vld [vmem:[%s2507_s0 + $0x20] sm:$0xff]  }
   0x4   :  { %1616 = vmatprep.subr.bf16.mxu0 %v1724_v1 }
   0x7   :  { %1617 = vmatpush3.bf16.msra.mxu0 %v1724_v1 }
   0xa   :  { %1619 = vmatmul.mubr.msk.bf16.vlgmr.msra.gmra.mxu0 %vm150_vm0, %v1726_v3 }
   0xb   :  { %1622 = vmatprep.mubr.msk.bf16.mxu0 %vm150_vm0, %v1727_v4 }
  0x12   :  { %1623 = vmatmul.mubr.msk.bf16.gmra.mxu0 %vm150_vm0, %v1728_v5 }
  0x13   :  { %10 = vsyncpa [#allocation3], 0  ;;  %1626 = vmatprep.mubr.msk.bf16.mxu0 %vm150_vm0, %v1729_v6  ;;  %v1730_v7 = vld [vmem:[%s2507_s0 + $0x28] sm:$0xff]   ;;  %v1731_v8 = vld [vmem:[%s2507_s0 + $0x30] sm:$0xff]   ;;  %vm877_vm1 = vcmask 130048   ;;  %vm1335_vm2 = vcmask 1041409  }
  0x14   :  { %v1732_v9 = vld [vmem:[%s2507_s0 + $0x38] sm:$0xff]   ;;  %v1733_v10 = vld [vmem:[%s2507_s0 + $0x40] sm:$0xff]   ;;  %v1734_v11 = vld [vmem:[%s2507_s0 + $0x48] sm:$0xff]   ;;  %vm1337_vm3 = vcmask 1042434   ;;  %vm1339_vm4 = vcmask 1043459   ;;  %vm1341_vm5 = vcmask 1044484  }
  0x15   :  { %v1735_v12 = vld [vmem:[%s2507_s0 + $0x50] sm:$0xff]   ;;  %v1736_v13 = vld [vmem:[%s2507_s0 + $0x58] sm:$0xff]   ;;  %v1737_v14 = vld [vmem:[%s2507_s0 + $0x60] sm:$0xff]   ;;  %vm1343_vm6 = vcmask 1045509   ;;  %vm1345_vm7 = vcmask 1046534   ;;  %vm1347_vm8 = vcmask 1047559  }
  0x16   :  { %v1738_v15 = vld [vmem:[%s2507_s0 + $0x68] sm:$0xff]   ;;  %v1739_v16 = vld [vmem:[%s2507_s0 + $0x70] sm:$0xff]   ;;  %v1740_v17 = vld [vmem:[%s2507_s0 + $0x78] sm:$0xff]   ;;  %s1891_s13 = smov [#allocation2]  }
  0x17   :  { %v555_v46 = vld [vmem:[%s2509_s2 + $0x18] sm:$0xff]  ;;  %v554_v48 = vld [vmem:[%s2509_s2 + $0x10] sm:$0xff]  ;;  %v553_v52 = vld [vmem:[%s2509_s2 + $0x8] sm:$0xff]  ;;  %s1472_s14 = sshll.u32 %s1891_s13, 4  ;;  %s1473_s14 = int_to_ptr.vmem [resolvable:$true] %s1472_s14 }
  0x18   :  { %1650 = vmatprep.subr.mxu1 %v555_v46  ;;  %v552_v54 = vld [vmem:[%s2509_s2] sm:$0xff]  ;;  %s1869_s15 = scalar_lea.vmem %s1473_s14, 512  ;;  %p1874_p1 = scmp.lt.s32.totalorder %s1473_s14, %s1473_s14 }
  0x19   :  { %1651 = vmatpush3.msra.mxu1 %v555_v46  ;;  %p1870_p0 = scmp.ne.s32.totalorder %s1473_s14, %s1869_s15  ;;  %p1875_p2 = scmp.lt.s32.totalorder %s1869_s15, %s1869_s15 }
  0x1a   :  { %1627 = vmatmul.mubr.msk.bf16.gmra.mxu0 %vm150_vm0, %v1730_v7  ;;  %1652 = vmatprep.subr.mxu1 %v554_v48 }
  0x1b   :  { %1630 = vmatprep.mubr.msk.bf16.mxu0 %vm150_vm0, %v1731_v8  ;;  %1653 = vmatpush3.msra.mxu1 %v554_v48  ;;  %p1876_p3 = por %p1875_p2, %p1874_p1 }
  0x1c   :  { %1654 = vmatprep.subr.mxu1 %v553_v52 }
  0x1d   :  { %1655 = vmatpush3.msra.mxu1 %v553_v52  ;;  %p1877_p4 = pnand %p1876_p3, %p1870_p0 }
  0x1e   :  { %1656 = vmatprep.subr.mxu1 %v552_v54 }
  0x1f   :  { %1657 = vmatpush3.msra.mxu1 %v552_v54 }
  0x22   :  { %1631 = vmatmul.mubr.msk.bf16.gmra.mxu0 %vm150_vm0, %v1732_v9 }
  0x23   :  { %1634 = vmatprep.mubr.msk.bf16.mxu0 %vm150_vm0, %v1733_v10 }
  0x2a   :  { %1635 = vmatmul.mubr.msk.bf16.gmra.mxu0 %vm150_vm0, %v1734_v11 }
  0x2b   :  { %1638 = vmatprep.mubr.msk.bf16.mxu0 %vm150_vm0, %v1735_v12 }
  0x32   :  { %1639 = vmatmul.mubr.msk.bf16.gmra.mxu0 %vm150_vm0, %v1736_v13 }
  0x33   :  { %1642 = vmatprep.mubr.msk.bf16.mxu0 %vm150_vm0, %v1737_v14 }
  0x3a   :  { %1643 = vmatmul.mubr.msk.bf16.gmra.mxu0 %vm150_vm0, %v1738_v15 }
  0x3b   :  { %1646 = vmatprep.mubr.msk.bf16.mxu0 %vm150_vm0, %v1739_v16 }
  0x42   :  { %1647 = vmatmul.mubr.msk.bf16.gmra.mxu0 %vm150_vm0, %v1740_v17 }
  0xca   :  { %v1994_v18 = vpop.f32.mrf.mxu0 }
  0xcb   :  { %v366_v19 = vsel %vm150_vm0, %v1994_v18, -inf }
  0xcc   :  { %367 = vmax.xlane.f32.xlu1 %v366_v19  ;;  %v1998_v20 = vpop.f32.mrf.mxu0 }
  0xcd   :  { %v360_v21 = vsel %vm150_vm0, %v1998_v20, -inf }
  0xce   :  { %361 = vmax.xlane.f32.xlu0 %v360_v21  ;;  %v2002_v22 = vpop.f32.mrf.mxu0 }
  0xcf   :  { %v369_v23 = vsel %vm150_vm0, %v2002_v22, -inf }
  0xd0   :  { %370 = vmax.xlane.f32.xlu1 %v369_v23  ;;  %v2006_v24 = vpop.f32.mrf.mxu0 }
  0xd1   :  { %v363_v25 = vsel %vm150_vm0, %v2006_v24, -inf }
  0xd2   :  { %364 = vmax.xlane.f32.xlu0 %v363_v25  ;;  %v2010_v26 = vpop.f32.mrf.mxu0 }
  0xd3   :  { %v378_v31 = vsel %vm150_vm0, %v2010_v26, -inf }
  0xd4   :  { %v2012_v27 = vpop.f32.mrf.mxu0 }
  0xd5   :  { %v372_v28 = vsel %vm150_vm0, %v2012_v27, -inf }
  0xd6   :  { %373 = vmax.xlane.f32.xlu0 %v372_v28  ;;  %v2016_v29 = vpop.f32.mrf.mxu0 }
  0xd7   :  { %v381_v35 = vsel %vm150_vm0, %v2016_v29, -inf }
  0xd8   :  { %v2018_v30 = vpop.f32.mrf.mxu0 }
  0xd9   :  { %v375_v32 = vsel %vm150_vm0, %v2018_v30, -inf }
  0xda   :  { %379 = vmax.xlane.f32.xlu0 %v378_v31  ;;  %376 = vmax.xlane.f32.xlu1 %v375_v32  ;;  %v2024_v33 = vpop.f32.mrf.mxu0 }
  0xdb   :  { %v390_v39 = vsel %vm150_vm0, %v2024_v33, -inf }
  0xdc   :  { %v2026_v34 = vpop.f32.mrf.mxu0 }
  0xdd   :  { %v384_v36 = vsel %vm150_vm0, %v2026_v34, -inf }
  0xde   :  { %382 = vmax.xlane.f32.xlu1 %v381_v35  ;;  %385 = vmax.xlane.f32.xlu0 %v384_v36  ;;  %v2032_v37 = vpop.f32.mrf.mxu0 }
  0xdf   :  { %v393_v43 = vsel %vm150_vm0, %v2032_v37, -inf }
  0xe0   :  { %v2034_v38 = vpop.f32.mrf.mxu0 }
  0xe1   :  { %v387_v40 = vsel %vm150_vm0, %v2034_v38, -inf }
  0xe2   :  { %391 = vmax.xlane.f32.xlu0 %v390_v39  ;;  %388 = vmax.xlane.f32.xlu1 %v387_v40  ;;  %v2040_v41 = vpop.f32.mrf.mxu0 }
  0xe3   :  { %v402_v49 = vsel %vm150_vm0, %v2040_v41, -inf }
  0xe4   :  { %v2042_v42 = vpop.f32.mrf.mxu0 }
  0xe5   :  { %v396_v44 = vsel %vm150_vm0, %v2042_v42, -inf }
  0xe6   :  { %394 = vmax.xlane.f32.xlu1 %v393_v43  ;;  %397 = vmax.xlane.f32.xlu0 %v396_v44  ;;  %v2048_v45 = vpop.f32.mrf.mxu0 }
  0xe7   :  { %v405_v55 = vsel %vm150_vm0, %v2048_v45, -inf }
  0xe8   :  { %v2053_v47 = vpop.f32.mrf.mxu0 }
  0xe9   :  { %v399_v50 = vsel %vm150_vm0, %v2053_v47, -inf }
  0xea   :  { %403 = vmax.xlane.f32.xlu0 %v402_v49  ;;  %400 = vmax.xlane.f32.xlu1 %v399_v50  ;;  %v2062_v51 = vpop.f32.mrf.mxu0 }
  0xeb   :  { %v414_v59 = vsel %vm150_vm0, %v2062_v51, -inf }
  0xec   :  { %v2067_v53 = vpop.f32.mrf.mxu0 }
  0xed   :  { %v408_v56 = vsel %vm150_vm0, %v2067_v53, -inf }
  0xee   :  { %406 = vmax.xlane.f32.xlu1 %v405_v55  ;;  %409 = vmax.xlane.f32.xlu0 %v408_v56  ;;  %v2076_v57 = vpop.f32.mrf.mxu0 }
  0xef   :  { %v417_v63 = vsel %vm150_vm0, %v2076_v57, -inf }
  0xf0   :  { %v2078_v58 = vpop.f32.mrf.mxu0 }
  0xf1   :  { %v411_v60 = vsel %vm150_vm0, %v2078_v58, -inf }
  0xf2   :  { %415 = vmax.xlane.f32.xlu0 %v414_v59  ;;  %412 = vmax.xlane.f32.xlu1 %v411_v60  ;;  %v2084_v61 = vpop.f32.mrf.mxu0 }
  0xf3   :  { %v426_v3 = vsel %vm150_vm0, %v2084_v61, -inf }
  0xf4   :  { %v2086_v62 = vpop.f32.mrf.mxu0 }
  0xf5   :  { %v420_v0 = vsel %vm150_vm0, %v2086_v62, -inf }
  0xf6   :  { %418 = vmax.xlane.f32.xlu1 %v417_v63  ;;  %421 = vmax.xlane.f32.xlu0 %v420_v0  ;;  %v2092_v1 = vpop.f32.mrf.mxu0 }
  0xf7   :  { %v429_v7 = vsel %vm150_vm0, %v2092_v1, -inf }
  0xf8   :  { %v2094_v2 = vpop.f32.mrf.mxu0 }
  0xf9   :  { %v423_v4 = vsel %vm150_vm0, %v2094_v2, -inf }
  0xfa   :  { %427 = vmax.xlane.f32.xlu0 %v426_v3  ;;  %424 = vmax.xlane.f32.xlu1 %v423_v4  ;;  %v2100_v5 = vpop.f32.mrf.mxu0 }
  0xfb   :  { %v438_v11 = vsel %vm150_vm0, %v2100_v5, -inf }
  0xfc   :  { %v2102_v6 = vpop.f32.mrf.mxu0 }
  0xfd   :  { %v432_v8 = vsel %vm150_vm0, %v2102_v6, -inf }
  0xfe   :  { %430 = vmax.xlane.f32.xlu1 %v429_v7  ;;  %433 = vmax.xlane.f32.xlu0 %v432_v8  ;;  %v2108_v9 = vpop.f32.mrf.mxu0 }
  0xff   :  { %v441_v15 = vsel %vm150_vm0, %v2108_v9, -inf }
 0x100   :  { %v2110_v10 = vpop.f32.mrf.mxu0 }
 0x101   :  { %v435_v12 = vsel %vm150_vm0, %v2110_v10, -inf }
 0x102   :  { %439 = vmax.xlane.f32.xlu0 %v438_v11  ;;  %436 = vmax.xlane.f32.xlu1 %v435_v12  ;;  %v2116_v13 = vpop.f32.mrf.mxu0 }
 0x103   :  { %v450_v19 = vsel %vm150_vm0, %v2116_v13, -inf }
 0x104   :  { %v2118_v14 = vpop.f32.mrf.mxu0 }
 0x105   :  { %v444_v16 = vsel %vm150_vm0, %v2118_v14, -inf }
 0x106   :  { %442 = vmax.xlane.f32.xlu1 %v441_v15  ;;  %445 = vmax.xlane.f32.xlu0 %v444_v16  ;;  %v2124_v17 = vpop.f32.mrf.mxu0 }
 0x107   :  { %v453_v25 = vsel %vm150_vm0, %v2124_v17, -inf }
 0x108   :  { %v2128_v21 = vpop.f32.mrf.mxu0 }
 0x109   :  { %v447_v23 = vsel %vm150_vm0, %v2128_v21, -inf }
 0x10a   :  { %451 = vmax.xlane.f32.xlu0 %v450_v19  ;;  %448 = vmax.xlane.f32.xlu1 %v447_v23 }
 0x10e   :  { %454 = vmax.xlane.f32.xlu1 %v453_v25 }
 0x155   :  { %v368_v28 = vpop.xlane.xlu1 %367 }
 0x156   :  { %v458_v35 = vsub.f32 %v1994_v18, %v368_v28 }
 0x157   :  { %v362_v31 = vpop.xlane.xlu0 %361 }
 0x158   :  { %v456_v32 = vsub.f32 %v1998_v20, %v362_v31  ;;  %v492_v46 = vmul.f32 1.442695, %v458_v35 }
 0x159   :  { %v371_v36 = vpop.xlane.xlu1 %370 }
 0x15a   :  { %v488_v39 = vmul.f32 1.442695, %v456_v32  ;;  %v459_v40 = vsub.f32 %v2002_v22, %v371_v36 }
 0x15b   :  { %v365_v43 = vpop.xlane.xlu0 %364 }
 0x15c   :  { %1741 = vpow2.f32 %v488_v39  ;;  %v457_v44 = vsub.f32 %v2006_v24, %v365_v43  ;;  %v494_v49 = vmul.f32 1.442695, %v459_v40 }
 0x15e   :  { %v490_v48 = vmul.f32 1.442695, %v457_v44 }
 0x15f   :  { %v374_v50 = vpop.xlane.xlu0 %373 }
 0x160   :  { %1743 = vpow2.f32 %v490_v48  ;;  %v460_v52 = vsub.f32 %v2012_v27, %v374_v50 }
 0x161   :  { %1745 = vpow2.f32 %v492_v46 }
 0x162   :  { %v496_v54 = vmul.f32 1.442695, %v460_v52  ;;  %1747 = vpow2.f32 %v494_v49 }
 0x163   :  { %v380_v20 = vpop.xlane.xlu0 %379  ;;  %v377_v18 = vpop.xlane.xlu1 %376 }
 0x164   :  { %1749 = vpow2.f32 %v496_v54  ;;  %v462_v55 = vsub.f32 %v2010_v26, %v380_v20  ;;  %v461_v22 = vsub.f32 %v2018_v30, %v377_v18 }
 0x166   :  { %v500_v56 = vmul.f32 1.442695, %v462_v55  ;;  %v498_v59 = vmul.f32 1.442695, %v461_v22 }
 0x167   :  { %v383_v24 = vpop.xlane.xlu1 %382  ;;  %v386_v60 = vpop.xlane.xlu0 %385 }
 0x168   :  { %1751 = vpow2.f32 %v500_v56  ;;  %v463_v63 = vsub.f32 %v2016_v29, %v383_v24  ;;  %v464_v0 = vsub.f32 %v2026_v34, %v386_v60 }
 0x169   :  { %v1742_v27 = vpop.eup %1741  ;;  %1753 = vpow2.f32 %v498_v59 }
 0x16a   :  { %v502_v3 = vmul.f32 1.442695, %v463_v63  ;;  %v504_v4 = vmul.f32 1.442695, %v464_v0  ;;  %1658 = vmatprep.mubr.msk.f32.mxu1 %vm150_vm0, %v1742_v27 }
 0x16b   :  { %v392_v7 = vpop.xlane.xlu0 %391  ;;  %v389_v8 = vpop.xlane.xlu1 %388 }
 0x16c   :  { %1755 = vpow2.f32 %v502_v3  ;;  %v466_v26 = vsub.f32 %v2024_v33, %v392_v7  ;;  %v465_v30 = vsub.f32 %v2034_v38, %v389_v8 }
 0x16d   :  { %v1744_v11 = vpop.eup %1743  ;;  %1757 = vpow2.f32 %v504_v4 }
 0x16e   :  { %v1746_v12 = vpop.eup %1745  ;;  %v508_v15 = vmul.f32 1.442695, %v466_v26  ;;  %v506_v29 = vmul.f32 1.442695, %v465_v30  ;;  %1659 = vmatmul.mubr.msk.f32.vlgmr.msra.gmra.mxu1 %vm150_vm0, %v1744_v11 }
 0x16f   :  { %1661 = vmatprep.mubr.msk.f32.mxu1 %vm150_vm0, %v1746_v12  ;;  %v395_v34 = vpop.xlane.xlu1 %394  ;;  %v398_v16 = vpop.xlane.xlu0 %397 }
 0x170   :  { %v1748_v19 = vpop.eup %1747  ;;  %1759 = vpow2.f32 %v508_v15  ;;  %v467_v23 = vsub.f32 %v2032_v37, %v395_v34  ;;  %v468_v25 = vsub.f32 %v2042_v42, %v398_v16 }
 0x171   :  { %v1750_v33 = vpop.eup %1749  ;;  %1761 = vpow2.f32 %v506_v29 }
 0x172   :  { %v510_v38 = vmul.f32 1.442695, %v467_v23  ;;  %v512_v28 = vmul.f32 1.442695, %v468_v25  ;;  %1662 = vmatmul.mubr.msk.f32.gmra.mxu1 %vm150_vm0, %v1748_v19 }
 0x173   :  { %1664 = vmatprep.mubr.msk.f32.mxu1 %vm150_vm0, %v1750_v33  ;;  %v404_v31 = vpop.xlane.xlu0 %403  ;;  %v401_v32 = vpop.xlane.xlu1 %400 }
 0x174   :  { %1763 = vpow2.f32 %v510_v38  ;;  %v470_v35 = vsub.f32 %v2040_v41, %v404_v31  ;;  %v469_v36 = vsub.f32 %v2053_v47, %v401_v32 }
 0x175   :  { %v1752_v39 = vpop.eup %1751  ;;  %1765 = vpow2.f32 %v512_v28 }
 0x176   :  { %v1754_v37 = vpop.eup %1753  ;;  %v516_v40 = vmul.f32 1.442695, %v470_v35  ;;  %v514_v42 = vmul.f32 1.442695, %v469_v36 }
 0x177   :  { %1665 = vmatmul.mubr.msk.f32.gmra.mxu1 %vm150_vm0, %v1754_v37  ;;  %v407_v43 = vpop.xlane.xlu1 %406  ;;  %v410_v44 = vpop.xlane.xlu0 %409 }
 0x178   :  { %1767 = vpow2.f32 %v516_v40  ;;  %1667 = vmatprep.mubr.msk.f32.mxu1 %vm150_vm0, %v1752_v39  ;;  %v471_v46 = vsub.f32 %v2048_v45, %v407_v43  ;;  %v472_v48 = vsub.f32 %v2067_v53, %v410_v44 }
 0x179   :  { %v1756_v49 = vpop.eup %1755  ;;  %1769 = vpow2.f32 %v514_v42 }
 0x17a   :  { %v1758_v41 = vpop.eup %1757  ;;  %v518_v47 = vmul.f32 1.442695, %v471_v46  ;;  %v520_v50 = vmul.f32 1.442695, %v472_v48 }
 0x17b   :  { %1668 = vmatmul.mubr.msk.f32.gmra.mxu1 %vm150_vm0, %v1756_v49  ;;  %v416_v52 = vpop.xlane.xlu0 %415  ;;  %v413_v54 = vpop.xlane.xlu1 %412 }
 0x17c   :  { %1771 = vpow2.f32 %v518_v47  ;;  %1670 = vmatprep.mubr.msk.f32.mxu1 %vm150_vm0, %v1758_v41  ;;  %v474_v20 = vsub.f32 %v2062_v51, %v416_v52  ;;  %v473_v18 = vsub.f32 %v2078_v58, %v413_v54 }
 0x17d   :  { %v1760_v55 = vpop.eup %1759  ;;  %1773 = vpow2.f32 %v520_v50 }
 0x17e   :  { %v1762_v45 = vpop.eup %1761  ;;  %v524_v53 = vmul.f32 1.442695, %v474_v20  ;;  %v522_v22 = vmul.f32 1.442695, %v473_v18 }
 0x17f   :  { %1671 = vmatmul.mubr.msk.f32.gmra.mxu1 %vm150_vm0, %v1762_v45  ;;  %v419_v56 = vpop.xlane.xlu1 %418  ;;  %v422_v59 = vpop.xlane.xlu0 %421 }
 0x180   :  { %1775 = vpow2.f32 %v524_v53  ;;  %1673 = vmatprep.mubr.msk.f32.mxu1 %vm150_vm0, %v1760_v55  ;;  %v475_v24 = vsub.f32 %v2076_v57, %v419_v56  ;;  %v476_v60 = vsub.f32 %v2086_v62, %v422_v59 }
 0x181   :  { %v1764_v63 = vpop.eup %1763  ;;  %1777 = vpow2.f32 %v522_v22 }
 0x182   :  { %v1766_v51 = vpop.eup %1765  ;;  %v526_v58 = vmul.f32 1.442695, %v475_v24  ;;  %v528_v0 = vmul.f32 1.442695, %v476_v60 }
 0x183   :  { %1674 = vmatmul.mubr.msk.f32.gmra.mxu1 %vm150_vm0, %v1764_v63  ;;  %v428_v27 = vpop.xlane.xlu0 %427  ;;  %v425_v3 = vpop.xlane.xlu1 %424 }
 0x184   :  { %1779 = vpow2.f32 %v526_v58  ;;  %1676 = vmatprep.mubr.msk.f32.mxu1 %vm150_vm0, %v1766_v51  ;;  %v478_v4 = vsub.f32 %v2084_v61, %v428_v27  ;;  %v477_v7 = vsub.f32 %v2094_v2, %v425_v3 }
 0x185   :  { %v1768_v8 = vpop.eup %1767  ;;  %1781 = vpow2.f32 %v528_v0 }
 0x186   :  { %v1770_v57 = vpop.eup %1769  ;;  %v532_v62 = vmul.f32 1.442695, %v478_v4  ;;  %v530_v26 = vmul.f32 1.442695, %v477_v7 }
 0x187   :  { %1677 = vmatmul.mubr.msk.f32.gmra.mxu1 %vm150_vm0, %v1770_v57  ;;  %v431_v30 = vpop.xlane.xlu1 %430  ;;  %v434_v11 = vpop.xlane.xlu0 %433 }
 0x188   :  { %1783 = vpow2.f32 %v532_v62  ;;  %1679 = vmatprep.mubr.msk.f32.mxu1 %vm150_vm0, %v1768_v8  ;;  %v479_v12 = vsub.f32 %v2092_v1, %v431_v30  ;;  %v480_v15 = vsub.f32 %v2102_v6, %v434_v11 }
 0x189   :  { %v1772_v29 = vpop.eup %1771  ;;  %1785 = vpow2.f32 %v530_v26 }
 0x18a   :  { %v1774_v61 = vpop.eup %1773  ;;  %v534_v2 = vmul.f32 1.442695, %v479_v12  ;;  %v536_v34 = vmul.f32 1.442695, %v480_v15 }
 0x18b   :  { %1680 = vmatmul.mubr.msk.f32.gmra.mxu1 %vm150_vm0, %v1772_v29  ;;  %v440_v16 = vpop.xlane.xlu0 %439  ;;  %v437_v19 = vpop.xlane.xlu1 %436 }
 0x18c   :  { %1787 = vpow2.f32 %v534_v2  ;;  %1682 = vmatprep.mubr.msk.f32.mxu1 %vm150_vm0, %v1774_v61  ;;  %v482_v23 = vsub.f32 %v2100_v5, %v440_v16  ;;  %v481_v25 = vsub.f32 %v2110_v10, %v437_v19 }
 0x18d   :  { %v1776_v33 = vpop.eup %1775  ;;  %1789 = vpow2.f32 %v536_v34 }
 0x18e   :  { %v1778_v1 = vpop.eup %1777  ;;  %v540_v6 = vmul.f32 1.442695, %v482_v23  ;;  %v538_v38 = vmul.f32 1.442695, %v481_v25 }
 0x18f   :  { %1683 = vmatmul.mubr.msk.f32.gmra.mxu1 %vm150_vm0, %v1778_v1  ;;  %v443_v28 = vpop.xlane.xlu1 %442  ;;  %v446_v31 = vpop.xlane.xlu0 %445 }
 0x190   :  { %1791 = vpow2.f32 %v540_v6  ;;  %1685 = vmatprep.mubr.msk.f32.mxu1 %vm150_vm0, %v1776_v33  ;;  %v483_v32 = vsub.f32 %v2108_v9, %v443_v28  ;;  %v484_v35 = vsub.f32 %v2118_v14, %v446_v31 }
 0x191   :  { %v1780_v36 = vpop.eup %1779  ;;  %1793 = vpow2.f32 %v538_v38 }
 0x192   :  { %v1782_v5 = vpop.eup %1781  ;;  %v542_v10 = vmul.f32 1.442695, %v483_v32  ;;  %v544_v39 = vmul.f32 1.442695, %v484_v35 }
 0x193   :  { %1686 = vmatmul.mubr.msk.f32.gmra.mxu1 %vm150_vm0, %v1780_v36  ;;  %v452_v37 = vpop.xlane.xlu0 %451  ;;  %v449_v40 = vpop.xlane.xlu1 %448 }
 0x194   :  { %1795 = vpow2.f32 %v542_v10  ;;  %1688 = vmatprep.mubr.msk.f32.mxu1 %vm150_vm0, %v1782_v5  ;;  %v486_v42 = vsub.f32 %v2116_v13, %v452_v37  ;;  %v485_v43 = vsub.f32 %v2128_v21, %v449_v40 }
 0x195   :  { %v1784_v44 = vpop.eup %1783  ;;  %1797 = vpow2.f32 %v544_v39 }
 0x196   :  { %v1786_v9 = vpop.eup %1785  ;;  %v548_v14 = vmul.f32 1.442695, %v486_v42  ;;  %v546_v46 = vmul.f32 1.442695, %v485_v43 }
 0x197   :  { %1689 = vmatmul.mubr.msk.f32.gmra.mxu1 %vm150_vm0, %v1786_v9  ;;  %v455_v48 = vpop.xlane.xlu1 %454 }
 0x198   :  { %1799 = vpow2.f32 %v548_v14  ;;  %1691 = vmatprep.mubr.msk.f32.mxu1 %vm150_vm0, %v1784_v44  ;;  %v487_v49 = vsub.f32 %v2124_v17, %v455_v48 }
 0x199   :  { %v1788_v41 = vpop.eup %1787  ;;  %1801 = vpow2.f32 %v546_v46 }
 0x19a   :  { %v1790_v47 = vpop.eup %1789  ;;  %v550_v50 = vmul.f32 1.442695, %v487_v49 }
 0x19b   :  { %1692 = vmatmul.mubr.msk.f32.gmra.mxu1 %vm150_vm0, %v1788_v41 }
 0x19c   :  { %1803 = vpow2.f32 %v550_v50  ;;  %1694 = vmatprep.mubr.msk.f32.mxu1 %vm150_vm0, %v1790_v47 }
 0x19d   :  { %v1792_v13 = vpop.eup %1791 }
 0x19e   :  { %v1794_v21 = vpop.eup %1793 }
 0x19f   :  { %1695 = vmatmul.mubr.msk.f32.gmra.mxu1 %vm150_vm0, %v1794_v21 }
 0x1a0   :  { %1697 = vmatprep.mubr.msk.f32.mxu1 %vm150_vm0, %v1792_v13 }
 0x1a1   :  { %v1796_v52 = vpop.eup %1795 }
 0x1a2   :  { %v1798_v54 = vpop.eup %1797 }
 0x1a3   :  { %1698 = vmatmul.mubr.msk.f32.gmra.mxu1 %vm150_vm0, %v1796_v52 }
 0x1a4   :  { %1700 = vmatprep.mubr.msk.f32.mxu1 %vm150_vm0, %v1798_v54 }
 0x1a5   :  { %v1800_v17 = vpop.eup %1799 }
 0x1a6   :  { %v1802_v20 = vpop.eup %1801 }
 0x1a7   :  { %1701 = vmatmul.mubr.msk.f32.gmra.mxu1 %vm150_vm0, %v1802_v20 }
 0x1a8   :  { %1703 = vmatprep.mubr.msk.f32.mxu1 %vm150_vm0, %v1800_v17 }
 0x1a9   :  { %v1804_v18 = vpop.eup %1803 }
 0x1ab   :  { %1704 = vmatmul.mubr.msk.f32.gmra.mxu1 %vm150_vm0, %v1804_v18  ;;  %v1295_v18 = vld [vmem:[%s2510_s3 + $0x8] sm:$0xff] }
 0x1ac   :  { %1706 = vmatprep.subr.mxu0 %v1295_v18  ;;  %1716 = vmatprep.subr.mxu1 %v1295_v18 }
 0x1ad   :  { %1707 = vmatpush3.msra.mxu0 %v1295_v18  ;;  %1718 = vmatpush3.msra.mxu1 %v1295_v18 }
 0x22e   :  { %v2198_v55 = vpop.f32.mrf.mxu1 }
 0x22f   :  { %v881_v45 = vsel %vm877_vm1, %v2198_v55, 0.0 }
 0x230   :  { %v2202_v53 = vpop.f32.mrf.mxu1  ;;  %882 = vadd.xlane.f32.xlu1 %v881_v45 }
 0x231   :  { %v878_v22 = vsel %vm877_vm1, %v2202_v53, 0.0 }
 0x232   :  { %v2206_v56 = vpop.f32.mrf.mxu1  ;;  %879 = vadd.xlane.f32.xlu0 %v878_v22  ;;  %v1294_v22 = vld [vmem:[%s2510_s3] sm:$0xff] }
 0x233   :  { %v887_v24 = vsel %vm877_vm1, %v2206_v56, 0.0  ;;  %1708 = vmatprep.subr.mxu0 %v1294_v22  ;;  %1717 = vmatprep.subr.mxu1 %v1294_v22 }
 0x234   :  { %v2208_v59 = vpop.f32.mrf.mxu1  ;;  %1709 = vmatpush3.msra.mxu0 %v1294_v22  ;;  %1719 = vmatpush3.msra.mxu1 %v1294_v22 }
 0x235   :  { %v884_v51 = vsel %vm877_vm1, %v2208_v59, 0.0 }
 0x236   :  { %888 = vadd.xlane.f32.xlu0 %v887_v24 }
 0x237   :  { %v2212_v60 = vpop.f32.mrf.mxu1 }
 0x238   :  { %v893_v27 = vsel %vm877_vm1, %v2212_v60, 0.0 }
 0x239   :  { %v2214_v63 = vpop.f32.mrf.mxu1 }
 0x23a   :  { %885 = vadd.xlane.f32.xlu0 %v884_v51  ;;  %v890_v7 = vsel %vm877_vm1, %v2214_v63, 0.0 }
 0x23b   :  { %v2218_v58 = vpop.f32.mrf.mxu1 }
 0x23c   :  { %v899_v26 = vsel %vm877_vm1, %v2218_v58, 0.0 }
 0x23d   :  { %v2220_v0 = vpop.f32.mrf.mxu1 }
 0x23e   :  { %894 = vadd.xlane.f32.xlu0 %v893_v27  ;;  %v896_v15 = vsel %vm877_vm1, %v2220_v0, 0.0 }
 0x23f   :  { %v2224_v3 = vpop.f32.mrf.mxu1 }
 0x240   :  { %v905_v34 = vsel %vm877_vm1, %v2224_v3, 0.0 }
 0x241   :  { %v2226_v4 = vpop.f32.mrf.mxu1 }
 0x242   :  { %891 = vadd.xlane.f32.xlu0 %v890_v7  ;;  %v902_v8 = vsel %vm877_vm1, %v2226_v4, 0.0 }
 0x243   :  { %v2232_v57 = vpop.f32.mrf.mxu1  ;;  %903 = vadd.xlane.f32.xlu1 %v902_v8 }
 0x244   :  { %v911_v30 = vsel %vm877_vm1, %v2232_v57, 0.0 }
 0x245   :  { %v2234_v62 = vpop.f32.mrf.mxu1 }
 0x246   :  { %900 = vadd.xlane.f32.xlu0 %v899_v26  ;;  %v908_v29 = vsel %vm877_vm1, %v2234_v62, 0.0 }
 0x247   :  { %v2240_v11 = vpop.f32.mrf.mxu1  ;;  %912 = vadd.xlane.f32.xlu1 %v911_v30 }
 0x248   :  { %v917_v16 = vsel %vm877_vm1, %v2240_v11, 0.0 }
 0x249   :  { %v2242_v12 = vpop.f32.mrf.mxu1 }
 0x24a   :  { %897 = vadd.xlane.f32.xlu0 %v896_v15  ;;  %v914_v33 = vsel %vm877_vm1, %v2242_v12, 0.0 }
 0x24b   :  { %v2248_v61 = vpop.f32.mrf.mxu1  ;;  %909 = vadd.xlane.f32.xlu1 %v908_v29 }
 0x24c   :  { %v923_v13 = vsel %vm877_vm1, %v2248_v61, 0.0 }
 0x24d   :  { %v2250_v2 = vpop.f32.mrf.mxu1 }
 0x24e   :  { %906 = vadd.xlane.f32.xlu0 %v905_v34  ;;  %v920_v28 = vsel %vm877_vm1, %v2250_v2, 0.0 }
 0x24f   :  { %v2256_v19 = vpop.f32.mrf.mxu1  ;;  %918 = vadd.xlane.f32.xlu1 %v917_v16 }
 0x250   :  { %v929_v36 = vsel %vm877_vm1, %v2256_v19, 0.0 }
 0x251   :  { %v2258_v23 = vpop.f32.mrf.mxu1 }
 0x252   :  { %v926_v25 = vsel %vm877_vm1, %v2258_v23, 0.0 }
 0x253   :  { %v2264_v1 = vpop.f32.mrf.mxu1  ;;  %927 = vadd.xlane.f32.xlu0 %v926_v25  ;;  %915 = vadd.xlane.f32.xlu1 %v914_v33 }
 0x254   :  { %v935_v38 = vsel %vm877_vm1, %v2264_v1, 0.0 }
 0x255   :  { %v2266_v6 = vpop.f32.mrf.mxu1 }
 0x256   :  { %v932_v37 = vsel %vm877_vm1, %v2266_v6, 0.0 }
 0x257   :  { %v2272_v31 = vpop.f32.mrf.mxu1  ;;  %936 = vadd.xlane.f32.xlu0 %v935_v38  ;;  %921 = vadd.xlane.f32.xlu1 %v920_v28 }
 0x258   :  { %v941_v35 = vsel %vm877_vm1, %v2272_v31, 0.0 }
 0x259   :  { %v2274_v32 = vpop.f32.mrf.mxu1 }
 0x25a   :  { %v938_v39 = vsel %vm877_vm1, %v2274_v32, 0.0 }
 0x25b   :  { %v2280_v5 = vpop.f32.mrf.mxu1  ;;  %942 = vadd.xlane.f32.xlu0 %v941_v35  ;;  %930 = vadd.xlane.f32.xlu1 %v929_v36 }
 0x25c   :  { %v947_v41 = vsel %vm877_vm1, %v2280_v5, 0.0 }
 0x25d   :  { %v2282_v10 = vpop.f32.mrf.mxu1 }
 0x25e   :  { %v944_v43 = vsel %vm877_vm1, %v2282_v10, 0.0 }
 0x25f   :  { %v2288_v40 = vpop.f32.mrf.mxu1  ;;  %939 = vadd.xlane.f32.xlu0 %v938_v39  ;;  %933 = vadd.xlane.f32.xlu1 %v932_v37 }
 0x260   :  { %v953_v44 = vsel %vm877_vm1, %v2288_v40, 0.0 }
 0x261   :  { %v2290_v42 = vpop.f32.mrf.mxu1 }
 0x262   :  { %v950_v46 = vsel %vm877_vm1, %v2290_v42, 0.0 }
 0x263   :  { %v2296_v9 = vpop.f32.mrf.mxu1  ;;  %945 = vadd.xlane.f32.xlu0 %v944_v43  ;;  %954 = vadd.xlane.f32.xlu1 %v953_v44 }
 0x264   :  { %v959_v48 = vsel %vm877_vm1, %v2296_v9, 0.0 }
 0x265   :  { %v2298_v14 = vpop.f32.mrf.mxu1 }
 0x266   :  { %v956_v47 = vsel %vm877_vm1, %v2298_v14, 0.0 }
 0x267   :  { %951 = vadd.xlane.f32.xlu0 %v950_v46  ;;  %960 = vadd.xlane.f32.xlu1 %v959_v48  ;;  %v2304_v49 = vpop.f32.mrf.mxu1 }
 0x268   :  { %v965_v21 = vsel %vm877_vm1, %v2304_v49, 0.0 }
 0x269   :  { %v2310_v50 = vpop.f32.mrf.mxu1 }
 0x26a   :  { %v962_v54 = vsel %vm877_vm1, %v2310_v50, 0.0 }
 0x26b   :  { %948 = vadd.xlane.f32.xlu0 %v947_v41  ;;  %957 = vadd.xlane.f32.xlu1 %v956_v47  ;;  %v2316_v52 = vpop.f32.mrf.mxu1 }
 0x26c   :  { %v971_v45 = vsel %vm877_vm1, %v2316_v52, 0.0 }
 0x26d   :  { %v2320_v17 = vpop.f32.mrf.mxu1 }
 0x26e   :  { %v968_v20 = vsel %vm877_vm1, %v2320_v17, 0.0 }
 0x26f   :  { %924 = vadd.xlane.f32.xlu0 %v923_v13  ;;  %966 = vadd.xlane.f32.xlu1 %v965_v21 }
 0x273   :  { %963 = vadd.xlane.f32.xlu1 %v962_v54 }
 0x277   :  { %969 = vadd.xlane.f32.xlu1 %v968_v20 }
 0x27b   :  { %972 = vadd.xlane.f32.xlu1 %v971_v45 }
 0x2b9   :  { %v883_v24 = vpop.xlane.xlu1 %882 }
 0x2ba   :  { %1805 = vrcp.f32 %v883_v24 }
 0x2bb   :  { %v880_v51 = vpop.xlane.xlu0 %879 }
 0x2bc   :  { %1807 = vrcp.f32 %v880_v51 }
 0x2bf   :  { %v889_v27 = vpop.xlane.xlu0 %888 }
 0x2c0   :  { %1809 = vrcp.f32 %v889_v27 }
 0x2c3   :  { %v886_v7 = vpop.xlane.xlu0 %885 }
 0x2c4   :  { %1811 = vrcp.f32 %v886_v7 }
 0x2c7   :  { %v1806_v8 = vpop.eup %1805  ;;  %v895_v26 = vpop.xlane.xlu0 %894 }
 0x2c8   :  { %v1007_v30 = vmul.f32 %v1806_v8, %v2198_v55  ;;  %1813 = vrcp.f32 %v895_v26 }
 0x2c9   :  { %v1808_v15 = vpop.eup %1807 }
 0x2ca   :  { %v1045_v29 = vsel %vm877_vm1, %v1007_v30, 0.0  ;;  %v1006_v34 = vmul.f32 %v1808_v15, %v2202_v53 }
 0x2cb   :  { %v1046_v16 = vrot.slane %v1045_v29, 4  ;;  %v892_v25 = vpop.xlane.xlu0 %891 }
 0x2cc   :  { %v1038_v33 = vsel %vm877_vm1, %v1006_v34, 0.0  ;;  %1815 = vrcp.f32 %v892_v25  ;;  %v904_v38 = vpop.xlane.xlu1 %903 }
 0x2cd   :  { %v1810_v28 = vpop.eup %1809  ;;  %v1047_v35 = vadd.f32 %v1046_v16, %v1045_v29  ;;  %v1039_v36 = vrot.slane %v1038_v33, 4  ;;  %1817 = vrcp.f32 %v904_v38 }
 0x2ce   :  { %v1009_v39 = vmul.f32 %v1810_v28, %v2206_v56 }
 0x2cf   :  { %v1048_v37 = vrot.slane %v1047_v35, 2  ;;  %v1040_v55 = vadd.f32 %v1039_v36, %v1038_v33  ;;  %v901_v43 = vpop.xlane.xlu0 %900 }
 0x2d0   :  { %v1059_v44 = vsel %vm877_vm1, %v1009_v39, 0.0  ;;  %1819 = vrcp.f32 %v901_v43  ;;  %v913_v46 = vpop.xlane.xlu1 %912 }
 0x2d1   :  { %v1812_v53 = vpop.eup %1811  ;;  %v1049_v48 = vadd.f32 %v1048_v37, %v1047_v35  ;;  %v1041_v41 = vrot.slane %v1040_v55, 2  ;;  %v1060_v47 = vrot.slane %v1059_v44, 4  ;;  %1821 = vrcp.f32 %v913_v46 }
 0x2d2   :  { %v1008_v13 = vmul.f32 %v1812_v53, %v2208_v59 }
 0x2d3   :  { %v1042_v21 = vadd.f32 %v1041_v41, %v1040_v55  ;;  %v1061_v54 = vadd.f32 %v1060_v47, %v1059_v44  ;;  %v898_v20 = vpop.xlane.xlu0 %897  ;;  %v1050_v18 = vrot.slane %v1049_v48, 1 }
 0x2d4   :  { %v1052_v56 = vsel %vm877_vm1, %v1008_v13, 0.0  ;;  %1823 = vrcp.f32 %v898_v20  ;;  %v910_v45 = vpop.xlane.xlu1 %909 }
 0x2d5   :  { %v1814_v22 = vpop.eup %1813  ;;  %v1062_v24 = vrot.slane %v1061_v54, 2  ;;  %v1053_v51 = vrot.slane %v1052_v56, 4  ;;  %v1043_v27 = vrot.slane %v1042_v21, 1  ;;  %1825 = vrcp.f32 %v910_v45 }
 0x2d6   :  { %v1011_v7 = vmul.f32 %v1814_v22, %v2212_v60  ;;  %v1051_v15 = vadd.f32 %v1050_v18, %v1049_v48 }
 0x2d7   :  { %v1054_v8 = vadd.f32 %v1053_v51, %v1052_v56  ;;  %v907_v26 = vpop.xlane.xlu0 %906  ;;  %v1063_v30 = vadd.f32 %v1062_v24, %v1061_v54  ;;  %v1044_v38 = vadd.f32 %v1043_v27, %v1042_v21 }
 0x2d8   :  { %v1073_v59 = vsel %vm877_vm1, %v1011_v7, 0.0  ;;  %1827 = vrcp.f32 %v907_v26  ;;  %v919_v29 = vpop.xlane.xlu1 %918  ;;  %v1263_v44 = vmul.f32 0.125, %v1051_v15 }
 0x2d9   :  { %v1816_v34 = vpop.eup %1815  ;;  %v1055_v16 = vrot.slane %v1054_v8, 2  ;;  %v1074_v25 = vrot.slane %v1073_v59, 4  ;;  %1829 = vrcp.f32 %v919_v29  ;;  %v1064_v36 = vrot.slane %v1063_v30, 1 }
 0x2da   :  { %v1818_v33 = vpop.eup %1817  ;;  %v1010_v28 = vmul.f32 %v1816_v34, %v2214_v63  ;;  %v1262_v18 = vmul.f32 0.125, %v1044_v38 }
 0x2db   :  { %v1056_v35 = vadd.f32 %v1055_v16, %v1054_v8  ;;  %v1014_v60 = vmul.f32 %v1818_v33, %v2226_v4  ;;  %v1075_v39 = vadd.f32 %v1074_v25, %v1073_v59  ;;  %v1065_v20 = vadd.f32 %v1064_v36, %v1063_v30 }
 0x2dc   :  { %v1066_v37 = vsel %vm877_vm1, %v1010_v28, 0.0  ;;  %v928_v55 = vpop.xlane.xlu0 %927  ;;  %v916_v43 = vpop.xlane.xlu1 %915  ;;  %v2354_v25 = vsel %vm1335_vm2, %v1263_v44, %v1262_v18 }
 0x2dd   :  { %v1820_v46 = vpop.eup %1819  ;;  %v1057_v53 = vrot.slane %v1056_v35, 1  ;;  %v1067_v48 = vrot.slane %v1066_v37, 4  ;;  %v1094_v41 = vsel %vm877_vm1, %v1014_v60, 0.0  ;;  %1831 = vrcp.f32 %v928_v55 }
 0x2de   :  { %v1822_v47 = vpop.eup %1821  ;;  %v1095_v13 = vrot.slane %v1094_v41, 4  ;;  %v1013_v63 = vmul.f32 %v1820_v46, %v2218_v58  ;;  %1833 = vrcp.f32 %v916_v43  ;;  %v1076_v4 = vrot.slane %v1075_v39, 2 }
 0x2df   :  { %v1068_v21 = vadd.f32 %v1067_v48, %v1066_v37  ;;  %v1017_v54 = vmul.f32 %v1822_v47, %v2232_v57  ;;  %v1058_v24 = vadd.f32 %v1057_v53, %v1056_v35  ;;  %v2351_v16 = vmul.f32 0.125, %v1065_v20 }
 0x2e0   :  { %v1096_v56 = vadd.f32 %v1095_v13, %v1094_v41  ;;  %v937_v45 = vpop.xlane.xlu0 %936  ;;  %v922_v22 = vpop.xlane.xlu1 %921  ;;  %v1077_v51 = vadd.f32 %v1076_v4, %v1075_v39  ;;  %v1087_v27 = vsel %vm877_vm1, %v1013_v63, 0.0 }
 0x2e1   :  { %v1824_v7 = vpop.eup %1823  ;;  %v1115_v8 = vsel %vm877_vm1, %v1017_v54, 0.0  ;;  %1835 = vrcp.f32 %v937_v45  ;;  %v1069_v26 = vrot.slane %v1068_v21, 2  ;;  %v1088_v58 = vrot.slane %v1087_v27, 4 }
 0x2e2   :  { %v1097_v15 = vrot.slane %v1096_v56, 2  ;;  %v1116_v59 = vrot.slane %v1115_v8, 4  ;;  %v1012_v29 = vmul.f32 %v1824_v7, %v2220_v0  ;;  %1837 = vrcp.f32 %v922_v22  ;;  %v1826_v57 = vpop.eup %1825 }
 0x2e3   :  { %v1070_v30 = vadd.f32 %v1069_v26, %v1068_v21  ;;  %v1078_v34 = vrot.slane %v1077_v51, 1  ;;  %v1016_v28 = vmul.f32 %v1826_v57, %v2234_v62  ;;  %v2358_v37 = vadd.f32 %v1088_v58, %v1087_v27 }
 0x2e4   :  { %v1098_v33 = vadd.f32 %v1097_v15, %v1096_v56  ;;  %v1117_v38 = vadd.f32 %v1116_v59, %v1115_v8  ;;  %v943_v35 = vpop.xlane.xlu0 %942  ;;  %v931_v60 = vpop.xlane.xlu1 %930  ;;  %v1080_v36 = vsel %vm877_vm1, %v1012_v29, 0.0  ;;  %v2360_v55 = vmul.f32 0.125, %v1058_v24 }
 0x2e5   :  { %v1828_v39 = vpop.eup %1827  ;;  %1839 = vrcp.f32 %v943_v35  ;;  %v1081_v0 = vrot.slane %v1080_v36, 4  ;;  %v1108_v44 = vsel %vm877_vm1, %v1016_v28, 0.0  ;;  %v1071_v47 = vrot.slane %v1070_v30, 1 }
 0x2e6   :  { %v1830_v43 = vpop.eup %1829  ;;  %v1099_v46 = vrot.slane %v1098_v33, 1  ;;  %v1118_v53 = vrot.slane %v1117_v38, 2  ;;  %v1015_v48 = vmul.f32 %v1828_v39, %v2224_v3  ;;  %v1109_v41 = vrot.slane %v1108_v44, 4 }
 0x2e7   :  { %v1019_v62 = vmul.f32 %v1830_v43, %v2240_v11  ;;  %1841 = vrcp.f32 %v931_v60  ;;  %v2366_v20 = vadd.f32 %v1081_v0, %v1080_v36  ;;  %v2369_v11 = vadd.f32 %v1078_v34, %v1077_v51 }
 0x2e8   :  { %v1100_v13 = vadd.f32 %v1099_v46, %v1098_v33  ;;  %v1119_v63 = vadd.f32 %v1118_v53, %v1117_v38  ;;  %v1101_v4 = vsel %vm877_vm1, %v1015_v48, 0.0  ;;  %v940_v21 = vpop.xlane.xlu0 %939  ;;  %v934_v54 = vpop.xlane.xlu1 %933  ;;  %v1110_v18 = vadd.f32 %v1109_v41, %v1108_v44 }
 0x2e9   :  { %v1102_v56 = vrot.slane %v1101_v4, 4  ;;  %v1129_v45 = vsel %vm877_vm1, %v1019_v62, 0.0  ;;  %1843 = vrcp.f32 %v940_v21  ;;  %v2372_v58 = vadd.f32 %v1071_v47, %v1070_v30 }
 0x2ea   :  { %v1832_v22 = vpop.eup %1831  ;;  %v1120_v3 = vrot.slane %v1119_v63, 1  ;;  %v1130_v24 = vrot.slane %v1129_v45, 4  ;;  %1845 = vrcp.f32 %v934_v54  ;;  %v1111_v7 = vrot.slane %v1110_v18, 2 }
 0x2eb   :  { %v1834_v27 = vpop.eup %1833  ;;  %v1103_v8 = vadd.f32 %v1102_v56, %v1101_v4  ;;  %v1022_v26 = vmul.f32 %v1832_v22, %v2258_v23  ;;  %v2374_v15 = vmul.f32 0.125, %v1100_v13  ;;  %v1083_v38 = vrot.slane %v2366_v20, 2 }
 0x2ec   :  { %v1131_v59 = vadd.f32 %v1130_v24, %v1129_v45  ;;  %v1018_v29 = vmul.f32 %v1834_v27, %v2242_v12  ;;  %v946_v57 = vpop.xlane.xlu0 %945  ;;  %v955_v33 = vpop.xlane.xlu1 %954  ;;  %v2378_v28 = vadd.f32 %v1120_v3, %v1119_v63  ;;  %v1112_v51 = vadd.f32 %v1111_v7, %v1110_v18 }
 0x2ed   :  { %v1104_v34 = vrot.slane %v1103_v8, 2  ;;  %v1150_v35 = vsel %vm877_vm1, %v1022_v26, 0.0  ;;  %1847 = vrcp.f32 %v955_v33  ;;  %v1090_v62 = vrot.slane %v2358_v37, 2 }
 0x2ee   :  { %v1836_v60 = vpop.eup %1835  ;;  %v1132_v36 = vrot.slane %v1131_v59, 2  ;;  %v1151_v23 = vrot.slane %v1150_v35, 4  ;;  %v1122_v30 = vsel %vm877_vm1, %v1018_v29, 0.0  ;;  %v1113_v0 = vrot.slane %v1112_v51, 1 }
 0x2ef   :  { %v1838_v39 = vpop.eup %1837  ;;  %v1105_v43 = vadd.f32 %v1104_v34, %v1103_v8  ;;  %v1123_v12 = vrot.slane %v1122_v30, 4  ;;  %v1025_v46 = vmul.f32 %v1836_v60, %v2264_v1  ;;  %1849 = vrcp.f32 %v946_v57 }
 0x2f0   :  { %v1152_v53 = vadd.f32 %v1151_v23, %v1150_v35  ;;  %v1020_v44 = vmul.f32 %v1838_v39, %v2250_v2  ;;  %v952_v48 = vpop.xlane.xlu0 %951  ;;  %v961_v41 = vpop.xlane.xlu1 %960  ;;  %v1114_v47 = vadd.f32 %v1113_v0, %v1112_v51  ;;  %v2387_v2 = vadd.f32 %v1132_v36, %v1131_v59 }
 0x2f1   :  { %v1106_v13 = vrot.slane %v1105_v43, 1  ;;  %v1124_v63 = vadd.f32 %v1123_v12, %v1122_v30  ;;  %v1171_v4 = vsel %vm877_vm1, %v1025_v46, 0.0  ;;  %1851 = vrcp.f32 %v952_v48 }
 0x2f2   :  { %v1840_v21 = vpop.eup %1839  ;;  %v1153_v54 = vrot.slane %v1152_v53, 2  ;;  %v1172_v18 = vrot.slane %v1171_v4, 4  ;;  %v1136_v56 = vsel %vm877_vm1, %v1020_v44, 0.0  ;;  %1853 = vrcp.f32 %v961_v41 }
 0x2f3   :  { %v1107_v1 = vadd.f32 %v1106_v13, %v1105_v43  ;;  %v1125_v45 = vrot.slane %v1124_v63, 2  ;;  %v1137_v22 = vrot.slane %v1136_v56, 4  ;;  %v1027_v7 = vmul.f32 %v1840_v21, %v2272_v31 }
 0x2f4   :  { %v1842_v3 = vpop.eup %1841  ;;  %v1154_v24 = vadd.f32 %v1153_v54, %v1152_v53  ;;  %v2389_v27 = vadd.f32 %v1172_v18, %v1171_v4  ;;  %v949_v8 = vpop.xlane.xlu0 %948  ;;  %v1084_v33 = vadd.f32 %v1083_v38, %v2366_v20  ;;  %v2398_v34 = vmul.f32 0.125, %v1114_v47 }
 0x2f5   :  { %v958_v26 = vpop.xlane.xlu1 %957  ;;  %v2392_v29 = vadd.f32 %v1125_v45, %v1124_v63  ;;  %v2394_v57 = vadd.f32 %v1137_v22, %v1136_v56  ;;  %v1023_v59 = vmul.f32 %v1842_v3, %v2256_v19  ;;  %v2400_v35 = vmul.f32 0.125, %v1107_v1 }
 0x2f6   :  { %v1844_v51 = vpop.eup %1843  ;;  %v2403_v31 = vsel %vm877_vm1, %v1027_v7, 0.0  ;;  %1855 = vrcp.f32 %v949_v8  ;;  %v1155_v36 = vrot.slane %v1154_v24, 1  ;;  %v1174_v30 = vrot.slane %v2389_v27, 2 }
 0x2f7   :  { %v1846_v60 = vpop.eup %1845  ;;  %v1127_v23 = vrot.slane %v2392_v29, 1  ;;  %v1157_v19 = vsel %vm877_vm1, %v1023_v59, 0.0  ;;  %v1139_v20 = vrot.slane %v2394_v57, 2  ;;  %v1026_v39 = vmul.f32 %v1844_v51, %v2274_v32 }
 0x2f8   :  { %v1158_v38 = vrot.slane %v1157_v19, 4  ;;  %v1024_v0 = vmul.f32 %v1846_v60, %v2266_v6  ;;  %v1186_v12 = vrot.slane %v2403_v31, 4  ;;  %1857 = vrcp.f32 %v958_v26 }
 0x2f9   :  { %v967_v43 = vpop.xlane.xlu1 %966  ;;  %v1085_v46 = vrot.slane %v1084_v33, 1  ;;  %v1091_v53 = vadd.f32 %v1090_v62, %v2358_v37  ;;  %v1178_v48 = vsel %vm877_vm1, %v1026_v39, 0.0  ;;  %v1266_v47 = vmul.f32 0.125, %v2372_v58  ;;  %v925_v62 = vpop.xlane.xlu0 %924 }
 0x2fa   :  { %v1159_v44 = vadd.f32 %v1158_v38, %v1157_v19  ;;  %v1164_v41 = vsel %vm877_vm1, %v1024_v0, 0.0  ;;  %v1848_v13 = vpop.eup %1847  ;;  %v2416_v63 = vadd.f32 %v1155_v36, %v1154_v24  ;;  %v1179_v32 = vrot.slane %v1178_v48, 4 }
 0x2fb   :  { %v1165_v4 = vrot.slane %v1164_v41, 4  ;;  %v1086_v6 = vadd.f32 %v1085_v46, %v1084_v33  ;;  %v1031_v54 = vmul.f32 %v1848_v13, %v2288_v40  ;;  %v1092_v18 = vrot.slane %v1091_v53, 1 }
 0x2fc   :  { %v1160_v21 = vrot.slane %v1159_v44, 2  ;;  %v1338_v37 = vsel %vm1337_vm3, %v2360_v55, %v2354_v25  ;;  %v1850_v1 = vpop.eup %1849  ;;  %v1267_v58 = vmul.f32 0.125, %v2369_v11  ;;  %1859 = vrcp.f32 %v925_v62 }
 0x2fd   :  { %v964_v56 = vpop.xlane.xlu1 %963  ;;  %v1166_v45 = vadd.f32 %v1165_v4, %v1164_v41  ;;  %v1268_v22 = vmul.f32 0.125, %v1086_v6  ;;  %v1340_v3 = vsel %vm1339_vm4, %v2351_v16, %v1338_v37  ;;  %v1213_v7 = vsel %vm877_vm1, %v1031_v54, 0.0 }
 0x2fe   :  { %v1161_v24 = vadd.f32 %v1160_v21, %v1159_v44  ;;  %v1093_v8 = vadd.f32 %v1092_v18, %v1091_v53  ;;  %v1342_v40 = vsel %vm1341_vm5, %v1266_v47, %v1340_v3  ;;  %v1852_v26 = vpop.eup %1851  ;;  %v1214_v33 = vrot.slane %v1213_v7, 4 }
 0x2ff   :  { %v1167_v59 = vrot.slane %v1166_v45, 2  ;;  %v1344_v25 = vsel %vm1343_vm6, %v1267_v58, %v1342_v40  ;;  %v1180_v55 = vadd.f32 %v1179_v32, %v1178_v48  ;;  %v1030_v51 = vmul.f32 %v1852_v26, %v2290_v42  ;;  %v1854_v16 = vpop.eup %1853 }
 0x300   :  { %v1269_v11 = vmul.f32 0.125, %v1093_v8  ;;  %v1346_v60 = vsel %vm1345_vm7, %v1268_v22, %v1344_v25  ;;  %v1162_v19 = vrot.slane %v1161_v24, 1  ;;  %v1215_v39 = vadd.f32 %v1214_v33, %v1213_v7 }
 0x301   :  { %v970_v36 = vpop.xlane.xlu1 %969  ;;  %v1168_v38 = vadd.f32 %v1167_v59, %v1166_v45  ;;  %1861 = vrcp.f32 %v967_v43  ;;  %v1206_v0 = vsel %vm877_vm1, %v1030_v51, 0.0  ;;  %v1033_v46 = vmul.f32 %v1854_v16, %v2296_v9 }
 0x302   :  { %v1348_v53 = vsel %vm1347_vm8, %v1269_v11, %v1346_v60  ;;  %v1175_v44 = vadd.f32 %v1174_v30, %v2389_v27  ;;  %v1028_v42 = vmul.f32 %v1850_v1, %v2282_v10  ;;  %v1216_v41 = vrot.slane %v1215_v39, 2 }
 0x303   :  { %v1856_v48 = vpop.eup %1855  ;;  %v1207_v47 = vrot.slane %v1206_v0, 4  ;;  %1710 = vmatprep.mubr.msk.f32.mxu0 %vm877_vm1, %v1348_v53  ;;  %1863 = vrcp.f32 %v964_v56  ;;  %v1169_v13 = vrot.slane %v1168_v38, 1  ;;  %v1227_v32 = vsel %vm877_vm1, %v1033_v46, 0.0 }
 0x304   :  { %v1029_v43 = vmul.f32 %v1856_v48, %v2280_v5  ;;  %1865 = vrcp.f32 %v970_v36  ;;  %v1217_v9 = vadd.f32 %v1216_v41, %v1215_v39  ;;  %v1228_v21 = vrot.slane %v1227_v32, 4 }
 0x305   :  { %v973_v4 = vpop.xlane.xlu1 %972  ;;  %v1208_v6 = vadd.f32 %v1207_v47, %v1206_v0  ;;  %v1858_v27 = vpop.eup %1857  ;;  %v1163_v30 = vadd.f32 %v1162_v19, %v1161_v24  ;;  %v1176_v54 = vrot.slane %v1175_v44, 1  ;;  %v1181_v10 = vrot.slane %v1180_v55, 2 }
 0x306   :  { %1867 = vrcp.f32 %v973_v4  ;;  %v1187_v18 = vadd.f32 %v1186_v12, %v2403_v31  ;;  %v1218_v37 = vrot.slane %v1217_v9, 1  ;;  %v1229_v56 = vadd.f32 %v1228_v21, %v1227_v32 }
 0x307   :  { %v1209_v62 = vrot.slane %v1208_v6, 2  ;;  %v1032_v1 = vmul.f32 %v1858_v27, %v2298_v14  ;;  %v1182_v5 = vadd.f32 %v1181_v10, %v1180_v55  ;;  %v1192_v58 = vsel %vm877_vm1, %v1028_v42, 0.0 }
 0x308   :  { %v1188_v45 = vrot.slane %v1187_v18, 2  ;;  %v1199_v22 = vsel %vm877_vm1, %v1029_v43, 0.0  ;;  %v1230_v7 = vrot.slane %v1229_v56, 2  ;;  %v1170_v8 = vadd.f32 %v1169_v13, %v1168_v38 }
 0x309   :  { %v1210_v3 = vadd.f32 %v1209_v62, %v1208_v6  ;;  %v1220_v24 = vsel %vm877_vm1, %v1032_v1, 0.0  ;;  %v1183_v26 = vrot.slane %v1182_v5, 1  ;;  %v1193_v31 = vrot.slane %v1192_v58, 4  ;;  %v1860_v14 = vpop.eup %1859 }
 0x30a   :  { %v1221_v40 = vrot.slane %v1220_v24, 4  ;;  %v1189_v59 = vadd.f32 %v1188_v45, %v1187_v18  ;;  %v1231_v33 = vadd.f32 %v1230_v7, %v1229_v56  ;;  %v1177_v25 = vadd.f32 %v1176_v54, %v1175_v44 }
 0x30b   :  { %v1211_v12 = vrot.slane %v1210_v3, 1  ;;  %v1200_v51 = vrot.slane %v1199_v22, 4  ;;  %v2445_v55 = vadd.f32 %v1218_v37, %v1217_v9  ;;  %v1194_v36 = vadd.f32 %v1193_v31, %v1192_v58 }
 0x30c   :  { %v1222_v11 = vadd.f32 %v1221_v40, %v1220_v24  ;;  %v1190_v60 = vrot.slane %v1189_v59, 1  ;;  %v1232_v19 = vrot.slane %v1231_v33, 1  ;;  %v1021_v39 = vmul.f32 %v1860_v14, %v2248_v61 }
 0x30d   :  { %v1212_v16 = vadd.f32 %v1211_v12, %v1210_v3  ;;  %v1201_v0 = vadd.f32 %v1200_v51, %v1199_v22  ;;  %v1184_v53 = vadd.f32 %v1183_v26, %v1182_v5  ;;  %v1195_v42 = vrot.slane %v1194_v36, 2 }
 0x30e   :  { %v1862_v38 = vpop.eup %1861  ;;  %v1223_v46 = vrot.slane %v1222_v11, 2  ;;  %v1191_v48 = vadd.f32 %v1190_v60, %v1189_v59  ;;  %v1143_v44 = vsel %vm877_vm1, %v1021_v39, 0.0  ;;  %v1278_v13 = vmul.f32 0.125, %v2416_v63 }
 0x30f   :  { %v2448_v41 = vmul.f32 0.125, %v1212_v16  ;;  %v1035_v47 = vmul.f32 %v1862_v38, %v2304_v49  ;;  %v1144_v4 = vrot.slane %v1143_v44, 4  ;;  %v1196_v9 = vadd.f32 %v1195_v42, %v1194_v36 }
 0x310   :  { %v1864_v32 = vpop.eup %1863  ;;  %v1224_v43 = vadd.f32 %v1223_v46, %v1222_v11  ;;  %v1202_v6 = vrot.slane %v1201_v0, 2  ;;  %v2453_v21 = vadd.f32 %v1232_v19, %v1231_v33  ;;  %v1279_v10 = vmul.f32 0.125, %v1163_v30 }
 0x311   :  { %v1866_v61 = vpop.eup %1865  ;;  %v1241_v27 = vsel %vm877_vm1, %v1035_v47, 0.0  ;;  %v1034_v54 = vmul.f32 %v1864_v32, %v2310_v50  ;;  %v1280_v56 = vmul.f32 0.125, %v1170_v8  ;;  %v1197_v5 = vrot.slane %v1196_v9, 1 }
 0x312   :  { %v1225_v37 = vrot.slane %v1224_v43, 1  ;;  %v1242_v62 = vrot.slane %v1241_v27, 4  ;;  %v1036_v49 = vmul.f32 %v1866_v61, %v2320_v17  ;;  %v1203_v45 = vadd.f32 %v1202_v6, %v1201_v0 }
 0x313   :  { %v1868_v18 = vpop.eup %1867  ;;  %v1234_v63 = vsel %vm877_vm1, %v1034_v54, 0.0  ;;  %v1145_v58 = vadd.f32 %v1144_v4, %v1143_v44  ;;  %v1198_v30 = vadd.f32 %v1197_v5, %v1196_v9  ;;  %v1281_v33 = vmul.f32 0.125, %v1177_v25 }
 0x314   :  { %v1037_v1 = vmul.f32 %v1868_v18, %v2316_v52  ;;  %v1243_v22 = vadd.f32 %v1242_v62, %v1241_v27  ;;  %v1235_v3 = vrot.slane %v1234_v63, 4  ;;  %v1248_v7 = vsel %vm877_vm1, %v1036_v49, 0.0 }
 0x315   :  { %v1249_v24 = vrot.slane %v1248_v7, 4  ;;  %v1204_v40 = vrot.slane %v1203_v45, 1  ;;  %v1226_v26 = vadd.f32 %v1225_v37, %v1224_v43  ;;  %v1282_v52 = vmul.f32 0.125, %v1184_v53 }
 0x316   :  { %v1255_v50 = vsel %vm877_vm1, %v1037_v1, 0.0  ;;  %v1244_v59 = vrot.slane %v1243_v22, 2  ;;  %v1236_v17 = vadd.f32 %v1235_v3, %v1234_v63  ;;  %v1283_v60 = vmul.f32 0.125, %v1191_v48 }
 0x317   :  { %v1256_v8 = vrot.slane %v1255_v50, 4  ;;  %v1250_v31 = vadd.f32 %v1249_v24, %v1248_v7  ;;  %v1205_v12 = vadd.f32 %v1204_v40, %v1203_v45  ;;  %v1284_v16 = vmul.f32 0.125, %v1198_v30 }
 0x318   :  { %v1245_v51 = vadd.f32 %v1244_v59, %v1243_v22  ;;  %v1237_v14 = vrot.slane %v1236_v17, 2  ;;  %v1356_v39 = vsel %vm1335_vm2, %v1279_v10, %v1278_v13  ;;  %v1128_v46 = vadd.f32 %v1127_v23, %v2392_v29 }
 0x319   :  { %v1257_v11 = vadd.f32 %v1256_v8, %v1255_v50  ;;  %v1251_v36 = vrot.slane %v1250_v31, 2  ;;  %v1285_v19 = vmul.f32 0.125, %v1205_v12  ;;  %v1357_v38 = vsel %vm1337_vm3, %v1280_v56, %v1356_v39 }
 0x31a   :  { %v1238_v0 = vadd.f32 %v1237_v14, %v1236_v17  ;;  %v1134_v42 = vrot.slane %v2387_v2, 1  ;;  %v1358_v25 = vsel %vm1339_vm4, %v1281_v33, %v1357_v38  ;;  %v1140_v53 = vadd.f32 %v1139_v20, %v2394_v57  ;;  %v1549_v33 = vld [vmem:[%s2511_s4] ss:$0 sm:$0xff] }
 0x31b   :  { %v1146_v48 = vrot.slane %v1145_v58, 2  ;;  %v1273_v44 = vmul.f32 0.125, %v2378_v28  ;;  %v1359_v13 = vsel %vm1341_vm5, %v1282_v52, %v1358_v25  ;;  %v1274_v43 = vmul.f32 0.125, %v1128_v46 }
 0x31c   :  { %v1239_v47 = vrot.slane %v1238_v0, 1  ;;  %v1135_v32 = vadd.f32 %v1134_v42, %v2387_v2  ;;  %v1360_v4 = vsel %vm1343_vm6, %v1283_v60, %v1359_v13  ;;  %v1141_v29 = vrot.slane %v1140_v53, 1 }
 0x31d   :  { %v1147_v23 = vadd.f32 %v1146_v48, %v1145_v58  ;;  %v1349_v9 = vsel %vm1335_vm2, %v2400_v35, %v2374_v15  ;;  %v1288_v6 = vmul.f32 0.125, %v1226_v26  ;;  %v1361_v57 = vsel %vm1345_vm7, %v1284_v16, %v1360_v4 }
 0x31e   :  { %v1350_v28 = vsel %vm1337_vm3, %v2398_v34, %v1349_v9  ;;  %v1240_v20 = vadd.f32 %v1239_v47, %v1238_v0  ;;  %v1362_v61 = vsel %vm1347_vm8, %v1285_v19, %v1361_v57  ;;  %v1142_v27 = vadd.f32 %v1141_v29, %v1140_v53 }
 0x31f   :  { %v1148_v2 = vrot.slane %v1147_v23, 1  ;;  %v1351_v54 = vsel %vm1339_vm4, %v1273_v44, %v1350_v28  ;;  %1713 = vmatprep.mubr.msk.f32.mxu1 %vm877_vm1, %v1362_v61  ;;  %v1246_v18 = vrot.slane %v1245_v51, 1  ;;  %v1252_v37 = vadd.f32 %v1251_v36, %v1250_v31 }
 0x320   :  { %v1352_v10 = vsel %vm1341_vm5, %v1274_v43, %v1351_v54  ;;  %v1258_v15 = vrot.slane %v1257_v11, 2  ;;  %v1287_v35 = vmul.f32 0.125, %v2445_v55  ;;  %v1275_v49 = vmul.f32 0.125, %v1135_v32 }
 0x321   :  { %v1149_v62 = vadd.f32 %v1148_v2, %v1147_v23  ;;  %v1276_v56 = vmul.f32 0.125, %v1142_v27  ;;  %v1247_v34 = vadd.f32 %v1246_v18, %v1245_v51  ;;  %v1253_v63 = vrot.slane %v1252_v37, 1 }
 0x322   :  { %v1259_v1 = vadd.f32 %v1258_v15, %v1257_v11  ;;  %v1290_v5 = vmul.f32 0.125, %v1240_v20  ;;  %v1353_v58 = vsel %vm1343_vm6, %v1275_v49, %v1352_v10  ;;  %v1289_v22 = vmul.f32 0.125, %v2453_v21 }
 0x323   :  { %v1277_v45 = vmul.f32 0.125, %v1149_v62  ;;  %v1363_v3 = vsel %vm1335_vm2, %v1287_v35, %v2448_v41  ;;  %v1354_v7 = vsel %vm1345_vm7, %v1276_v56, %v1353_v58  ;;  %v1254_v24 = vadd.f32 %v1253_v63, %v1252_v37 }
 0x324   :  { %v1260_v50 = vrot.slane %v1259_v1, 1  ;;  %v1364_v55 = vsel %vm1337_vm3, %v1288_v6, %v1363_v3  ;;  %v1291_v59 = vmul.f32 0.125, %v1247_v34 }
 0x325   :  { %v1355_v30 = vsel %vm1347_vm8, %v1277_v45, %v1354_v7  ;;  %v1365_v40 = vsel %vm1339_vm4, %v1289_v22, %v1364_v55  ;;  %v1292_v17 = vmul.f32 0.125, %v1254_v24 }
 0x326   :  { %1711 = vmatmul.mubr.msk.f32.vlgmr.msra.gmra.mxu0 %vm877_vm1, %v1355_v30  ;;  %v1261_v26 = vadd.f32 %v1260_v50, %v1259_v1  ;;  %v1366_v21 = vsel %vm1341_vm5, %v1290_v5, %v1365_v40 }
 0x327   :  { %v1367_v41 = vsel %vm1343_vm6, %v1291_v59, %v1366_v21 }
 0x328   :  { %v1293_v8 = vmul.f32 0.125, %v1261_v26  ;;  %v1368_v31 = vsel %vm1345_vm7, %v1292_v17, %v1367_v41 }
 0x32a   :  { %v1369_v12 = vsel %vm1347_vm8, %v1293_v8, %v1368_v31 }
 0x32b   :  { %1714 = vmatmul.mubr.msk.f32.vlgmr.msra.gmra.mxu1 %vm877_vm1, %v1369_v12 }
 0x3e6   :  { %v1712_v52 = vpop.f32.mrf.mxu0 }
 0x3e7   :  { %v1450_v51 = vadd.f32 %v1712_v52, %v1549_v33 }
 0x3e8   :  { %v1444_v14 = vpop.f32.mrf.mxu0 }
 0x3e9   :  { %1464 = vst [vmem:[#allocation2 + $0x8] sm:$0xff] %v1450_v51  ;;  %v1445_v11 = vadd.f32 %v1549_v33, %v1444_v14 }
 0x3eb   :  { %1463 = vst [vmem:[#allocation2] sm:$0xff] %v1445_v11  ;;  %v1715_v60 = vpop.f32.mrf.mxu1 }
 0x3ec   :  { %v1460_v36 = vadd.f32 %v1715_v60, %v1549_v33 }
 0x3ed   :  { %v1454_v16 = vpop.f32.mrf.mxu1 }
 0x3ee   :  { %1466 = vst [vmem:[#allocation2 + $0x18] sm:$0xff] %v1460_v36  ;;  %v1455_v19 = vadd.f32 %v1549_v33, %v1454_v16 }
 0x3f0   :  { %1465 = vst [vmem:[#allocation2 + $0x10] sm:$0xff] %v1455_v19 }
 0x3f1   :  { %1880 = shalt.err (!%p1877_p4)
}
 0x3f2   :  { %s1892_s4 = smov 128   ;;  %s1893_s16 = smov 8  }
 0x3f3   :  { %1478 = dma.vmem_to_hbm [thread:$0]  %s1473_s14, 512, %s2512_s5, [#allocation3], %s1892_s4, %s1892_s4, %s1893_s16  }
 0x3f4   :  { %1889 = dma.done.wait [#allocation3], 512  }
 0x3f5   :  { %1890 = vsyncadd [#allocation3], 4294966784 }
 0x3f6   :  { %1482 = vsyncpa [#allocation3], 1 }

</bundles_post_ra>
